<compile_context>
chip_gen: v7x
topology: tpu7x:2x2x1
jax: 0.10.0
libtpu: 0.0.40
codegen_flags: <defaults>
</compile_context>

<pallas_src>
import jax
import jax.numpy as jnp
from jax.experimental import pallas as pl
from jax.experimental.pallas import tpu as pltpu

EPS = 1e-5  # nn.InstanceNorm2d default eps
_MXU_CHANNEL_THRESHOLD = 64  # below this, 1x1 conv goes to the VPU MAC path


def _instance_norm_rows(v):
    """v: (C, HW) float32; normalize each channel (row) over the spatial (lane) axis.

    Two-pass form (mean, then centered sum of squares) for numerical robustness.
    """
    n = v.shape[1]
    inv_n = 1.0 / n
    mean = jnp.sum(v, axis=1, keepdims=True) * inv_n
    centered = v - mean
    var = jnp.sum(centered * centered, axis=1, keepdims=True) * inv_n
    return centered * jax.lax.rsqrt(var + EPS)


def _conv1x1(w_ref, v):
    """1x1 conv of a (Cin, HW) tile with (Cout, Cin) weights -> (Cout, HW) f32.

    Small channel counts skip the MXU (it would be <3% utilized and only pad to
    the systolic tile) and use an unrolled VPU multiply-accumulate over Cin.
    """
    cout, cin = w_ref.shape
    if max(cout, cin) >= _MXU_CHANNEL_THRESHOLD:
        # Weights were pre-cast to the activation dtype in the wrapper, so this
        # is a native-dtype MXU matmul with f32 accumulation.
        return jnp.dot(w_ref[...], v, preferred_element_type=jnp.float32)
    w = w_ref[...].astype(jnp.float32)                      # tiny (Cout, Cin)
    acc = w[:, 0:1] * v[0:1, :]                             # (Cout, 1)*(1, HW) -> (Cout, HW) f32
    for c in range(1, cin):                                 # unrolled, cin is small & static
        acc = acc + w[:, c:c + 1] * v[c:c + 1, :]
    return acc


def attention_kernel(x_ref, g_ref, wx_ref, wg_ref, wt_ref, o_ref):
    # x_ref: (Cx, HW), g_ref: (Cg, HW) -- one batch element, channels on sublanes.
    x = x_ref[...]
    g = g_ref[...]

    # x_block / g_block: 1x1 conv (bias elided, cancelled by InstanceNorm) + IN.
    x_out = _instance_norm_rows(_conv1x1(wx_ref, x))         # (Ct, HW) f32
    g_out = _instance_norm_rows(_conv1x1(wg_ref, g))         # (Ct, HW) f32

    # relu(x_out + g_out)
    t_in = jnp.maximum(x_out + g_out, 0.0)                   # (Ct, HW) f32

    # t_block: Ct -> 1 channel.  N=1 MXU matmul wastes a full MXU pass, so do a
    # broadcast-multiply + cross-channel (sublane) reduce on VPU/XLU instead.
    wt = wt_ref[...].astype(jnp.float32)                      # (Ct, 1)
    att = jnp.sum(t_in * wt, axis=0, keepdims=True)           # (1, HW) f32
    att = _instance_norm_rows(att)
    att = jax.nn.sigmoid(att)

    # Gate the original x: multiply in x's native dtype, casting only the small
    # (1, HW) attention row (broadcast over channels / sublanes).
    o_ref[...] = (x * att.astype(x.dtype)).astype(o_ref.dtype)


def _vmem_limit_bytes(Cx, Cg, Ct, HW, dtype):
    """Derive a VMEM request from actual tile bytes; cap below v7x's 64 MiB."""
    bpe = jnp.dtype(dtype).itemsize
    io_bytes = 2 * (Cx + Cg + Cx) * HW * bpe          # double-buffered x, g, out tiles
    interm_bytes = (3 * Ct + Cx + 4) * HW * 4          # f32 intermediates (x_out, g_out, t_in, att, slack)
    limit = 2 * (io_bytes + interm_bytes) + (8 << 20)  # generous headroom for Mosaic scratch
    return int(max(16 << 20, min(limit, 48 << 20)))


def attention_block(x, g, params):
    """x: (B, Cx, H, W), g: (B, Cg, H, W) (NCHW, like PyTorch). Returns (B, Cx, H, W)."""
    B, Cx, H, W = x.shape
    _, Cg, _, _ = g.shape
    Ct = params["wx"].shape[0]
    HW = H * W  # lane-dense stores rely on HW % 128 == 0 (perf only, not correctness)

    # NCHW -> (B, C, HW): a free reshape (no transpose, no extra HBM pass).
    x_r = x.reshape(B, Cx, HW)
    g_r = g.reshape(B, Cg, HW)

    # Pre-cast the (tiny) weights to the activation dtype so bf16 activations
    # stream through the conv path with no in-kernel upcast of (Cin, HW) data.
    wx = params["wx"].astype(x.dtype)
    wg = params["wg"].astype(x.dtype)
    wt = params["wt"].astype(x.dtype)

    def batch_map(b):
        return (b, 0, 0)

    def param_map2d(b):
        return (0, 0)

    out = pl.pallas_call(
        attention_kernel,
        out_shape=jax.ShapeDtypeStruct((B, Cx, HW), x.dtype),
        grid_spec=pltpu.PrefetchScalarGridSpec(
            num_scalar_prefetch=0,
            grid=(B,),
            in_specs=[
                pl.BlockSpec((None, Cx, HW), batch_map),   # x (per-batch tile)
                pl.BlockSpec((None, Cg, HW), batch_map),   # g (per-batch tile)
                pl.BlockSpec((Ct, Cx), param_map2d),       # wx  (Cout, Cin)
                pl.BlockSpec((Ct, Cg), param_map2d),       # wg  (Cout, Cin)
                pl.BlockSpec((Ct, 1), param_map2d),        # wt  (Cin, 1)
            ],
            out_specs=pl.BlockSpec((None, Cx, HW), batch_map),
        ),
        compiler_params=pltpu.CompilerParams(
            dimension_semantics=("parallel",),
            vmem_limit_bytes=_vmem_limit_bytes(Cx, Cg, Ct, HW, x.dtype),
        ),
    )(x_r, g_r, wx, wg, wt)

    # (B, Cx, HW) -> NCHW: free reshape.
    return out.reshape(B, Cx, H, W)


def reference_attention_block(x, g, params):
    """Pure-JAX reference matching the PyTorch forward exactly (biases included)."""
    def inorm(v):  # v: (B, C, H, W)
        mean = jnp.mean(v, axis=(2, 3), keepdims=True)
        var = jnp.mean((v - mean) ** 2, axis=(2, 3), keepdims=True)
        return (v - mean) / jnp.sqrt(var + EPS)

    def conv1x1(v, w, b):  # w: (Cout, Cin), b: (Cout,)
        return jnp.einsum("bchw,oc->bohw", v, w) + b[None, :, None, None]

    x_out = inorm(conv1x1(x, params["wx"], params["bx"]))
    g_out = inorm(conv1x1(g, params["wg"], params["bg"]))
    t_in = jnp.maximum(x_out + g_out, 0.0)
    att = jax.nn.sigmoid(inorm(conv1x1(t_in, params["wt"].T, params["bt"])))
    return x * att


def make_params(key, in_channel_x, in_channel_g, channel_t):
    ks = jax.random.split(key, 6)
    # 1x1 conv weights stored as (Cout, Cin) matrices (== PyTorch (Cout,Cin,1,1) squeezed),
    # except wt which is kept as (Cin, 1) for the kernel's sublane-reduce t_block.
    return {
        "wx": jax.random.normal(ks[0], (channel_t, in_channel_x), jnp.float32) * 0.2,
        "bx": jax.random.normal(ks[1], (channel_t,), jnp.float32) * 0.1,
        "wg": jax.random.normal(ks[2], (channel_t, in_channel_g), jnp.float32) * 0.2,
        "bg": jax.random.normal(ks[3], (channel_t,), jnp.float32) * 0.1,
        "wt": jax.random.normal(ks[4], (channel_t, 1), jnp.float32) * 0.2,
        "bt": jax.random.normal(ks[5], (1,), jnp.float32) * 0.1,
    }


if __name__ == "__main__":
    B, Cx, Cg, Ct, H, W = 2, 4, 6, 8, 16, 16

    key = jax.random.PRNGKey(0)
    kx, kg, kp = jax.random.split(key, 3)
    x = jax.random.normal(kx, (B, Cx, H, W), jnp.float32)
    g = jax.random.normal(kg, (B, Cg, H, W), jnp.float32)
    params = make_params(kp, Cx, Cg, Ct)

    out = attention_block(x, g, params)
    out = jax.block_until_ready(out)

    ref = reference_attention_block(x, g, params)
    assert out.shape == (B, Cx, H, W)
    assert jnp.allclose(out, ref, atol=1e-4, rtol=1e-4), "mismatch vs reference"

    print("KERNEL_OK")
</pallas_src>

<mosaic_0001>
module attributes {stable_mosaic.version = 11 : i64} {
  func.func @attention_kernel(%arg0: i32, %arg1: memref<1x4x256xf32, #tpu.memory_space<vmem>>, %arg2: memref<1x6x256xf32, #tpu.memory_space<vmem>>, %arg3: memref<8x4xf32, #tpu.memory_space<vmem>>, %arg4: memref<8x6xf32, #tpu.memory_space<vmem>>, %arg5: memref<8x1xf32, #tpu.memory_space<vmem>>, %arg6: memref<1x4x256xf32, #tpu.memory_space<vmem>>) attributes {dimension_semantics = [#tpu.dimension_semantics<parallel>], iteration_bounds = array<i64: 2>, scalar_prefetch = 0 : i64, scratch_operands = 0 : i64, tpu.core_type = #tpu.core_type<tc>, window_params = [{transform_indices = @transform_0, window_bounds = array<i64: 1, 4, 256>}, {transform_indices = @transform_1, window_bounds = array<i64: 1, 6, 256>}, {pipeline_mode = #tpu.pipeline_mode<synchronous>, transform_indices = @transform_2, window_bounds = array<i64: 8, 4>}, {pipeline_mode = #tpu.pipeline_mode<synchronous>, transform_indices = @transform_3, window_bounds = array<i64: 8, 6>}, {pipeline_mode = #tpu.pipeline_mode<synchronous>, transform_indices = @transform_4, window_bounds = array<i64: 8, 1>}, {transform_indices = @transform_5, window_bounds = array<i64: 1, 4, 256>}]} {
    %c0 = arith.constant 0 : index
    %c0_0 = arith.constant 0 : index
    %c0_1 = arith.constant 0 : index
    %0 = vector.load %arg1[%c0, %c0_0, %c0_1] : memref<1x4x256xf32, #tpu.memory_space<vmem>>, vector<1x4x256xf32>
    %1 = vector.shape_cast %0 : vector<1x4x256xf32> to vector<4x256xf32>
    %c0_2 = arith.constant 0 : index
    %c0_3 = arith.constant 0 : index
    %c0_4 = arith.constant 0 : index
    %2 = vector.load %arg2[%c0_2, %c0_3, %c0_4] : memref<1x6x256xf32, #tpu.memory_space<vmem>>, vector<1x6x256xf32>
    %3 = vector.shape_cast %2 : vector<1x6x256xf32> to vector<6x256xf32>
    %c0_5 = arith.constant 0 : index
    %c0_6 = arith.constant 0 : index
    %4 = vector.load %arg3[%c0_5, %c0_6] : memref<8x4xf32, #tpu.memory_space<vmem>>, vector<8x4xf32>
    %5 = vector.extract_strided_slice %4 {offsets = [0, 0], sizes = [8, 1], strides = [1, 1]} : vector<8x4xf32> to vector<8x1xf32>
    %6 = vector.extract_strided_slice %1 {offsets = [0, 0], sizes = [1, 256], strides = [1, 1]} : vector<4x256xf32> to vector<1x256xf32>
    %7 = vector.broadcast %5 : vector<8x1xf32> to vector<8x256xf32>
    %8 = vector.broadcast %6 : vector<1x256xf32> to vector<8x256xf32>
    %9 = arith.mulf %7, %8 : vector<8x256xf32>
    %10 = vector.extract_strided_slice %4 {offsets = [0, 1], sizes = [8, 1], strides = [1, 1]} : vector<8x4xf32> to vector<8x1xf32>
    %11 = vector.extract_strided_slice %1 {offsets = [1, 0], sizes = [1, 256], strides = [1, 1]} : vector<4x256xf32> to vector<1x256xf32>
    %12 = vector.broadcast %10 : vector<8x1xf32> to vector<8x256xf32>
    %13 = vector.broadcast %11 : vector<1x256xf32> to vector<8x256xf32>
    %14 = arith.mulf %12, %13 : vector<8x256xf32>
    %15 = arith.addf %9, %14 : vector<8x256xf32>
    %16 = vector.extract_strided_slice %4 {offsets = [0, 2], sizes = [8, 1], strides = [1, 1]} : vector<8x4xf32> to vector<8x1xf32>
    %17 = vector.extract_strided_slice %1 {offsets = [2, 0], sizes = [1, 256], strides = [1, 1]} : vector<4x256xf32> to vector<1x256xf32>
    %18 = vector.broadcast %16 : vector<8x1xf32> to vector<8x256xf32>
    %19 = vector.broadcast %17 : vector<1x256xf32> to vector<8x256xf32>
    %20 = arith.mulf %18, %19 : vector<8x256xf32>
    %21 = arith.addf %15, %20 : vector<8x256xf32>
    %22 = vector.extract_strided_slice %4 {offsets = [0, 3], sizes = [8, 1], strides = [1, 1]} : vector<8x4xf32> to vector<8x1xf32>
    %23 = vector.extract_strided_slice %1 {offsets = [3, 0], sizes = [1, 256], strides = [1, 1]} : vector<4x256xf32> to vector<1x256xf32>
    %24 = vector.broadcast %22 : vector<8x1xf32> to vector<8x256xf32>
    %25 = vector.broadcast %23 : vector<1x256xf32> to vector<8x256xf32>
    %26 = arith.mulf %24, %25 : vector<8x256xf32>
    %27 = arith.addf %21, %26 : vector<8x256xf32>
    %cst = arith.constant dense<0.000000e+00> : vector<8xf32>
    %28 = vector.multi_reduction <add>, %27, %cst [1] : vector<8x256xf32> to vector<8xf32>
    %29 = vector.shape_cast %28 : vector<8xf32> to vector<8x1xf32>
    %cst_7 = arith.constant 3.906250e-03 : f32
    %30 = vector.broadcast %cst_7 : f32 to vector<8x1xf32>
    %31 = arith.mulf %29, %30 : vector<8x1xf32>
    %32 = vector.broadcast %31 : vector<8x1xf32> to vector<8x256xf32>
    %33 = arith.subf %27, %32 : vector<8x256xf32>
    %34 = arith.mulf %33, %33 : vector<8x256xf32>
    %cst_8 = arith.constant dense<0.000000e+00> : vector<8xf32>
    %35 = vector.multi_reduction <add>, %34, %cst_8 [1] : vector<8x256xf32> to vector<8xf32>
    %36 = vector.shape_cast %35 : vector<8xf32> to vector<8x1xf32>
    %cst_9 = arith.constant 3.906250e-03 : f32
    %37 = vector.broadcast %cst_9 : f32 to vector<8x1xf32>
    %38 = arith.mulf %36, %37 : vector<8x1xf32>
    %cst_10 = arith.constant 9.99999974E-6 : f32
    %39 = vector.broadcast %cst_10 : f32 to vector<8x1xf32>
    %40 = arith.addf %38, %39 : vector<8x1xf32>
    %41 = math.rsqrt %40 : vector<8x1xf32>
    %42 = vector.broadcast %41 : vector<8x1xf32> to vector<8x256xf32>
    %43 = arith.mulf %33, %42 : vector<8x256xf32>
    %c0_11 = arith.constant 0 : index
    %c0_12 = arith.constant 0 : index
    %44 = vector.load %arg4[%c0_11, %c0_12] : memref<8x6xf32, #tpu.memory_space<vmem>>, vector<8x6xf32>
    %45 = vector.extract_strided_slice %44 {offsets = [0, 0], sizes = [8, 1], strides = [1, 1]} : vector<8x6xf32> to vector<8x1xf32>
    %46 = vector.extract_strided_slice %3 {offsets = [0, 0], sizes = [1, 256], strides = [1, 1]} : vector<6x256xf32> to vector<1x256xf32>
    %47 = vector.broadcast %45 : vector<8x1xf32> to vector<8x256xf32>
    %48 = vector.broadcast %46 : vector<1x256xf32> to vector<8x256xf32>
    %49 = arith.mulf %47, %48 : vector<8x256xf32>
    %50 = vector.extract_strided_slice %44 {offsets = [0, 1], sizes = [8, 1], strides = [1, 1]} : vector<8x6xf32> to vector<8x1xf32>
    %51 = vector.extract_strided_slice %3 {offsets = [1, 0], sizes = [1, 256], strides = [1, 1]} : vector<6x256xf32> to vector<1x256xf32>
    %52 = vector.broadcast %50 : vector<8x1xf32> to vector<8x256xf32>
    %53 = vector.broadcast %51 : vector<1x256xf32> to vector<8x256xf32>
    %54 = arith.mulf %52, %53 : vector<8x256xf32>
    %55 = arith.addf %49, %54 : vector<8x256xf32>
    %56 = vector.extract_strided_slice %44 {offsets = [0, 2], sizes = [8, 1], strides = [1, 1]} : vector<8x6xf32> to vector<8x1xf32>
    %57 = vector.extract_strided_slice %3 {offsets = [2, 0], sizes = [1, 256], strides = [1, 1]} : vector<6x256xf32> to vector<1x256xf32>
    %58 = vector.broadcast %56 : vector<8x1xf32> to vector<8x256xf32>
    %59 = vector.broadcast %57 : vector<1x256xf32> to vector<8x256xf32>
    %60 = arith.mulf %58, %59 : vector<8x256xf32>
    %61 = arith.addf %55, %60 : vector<8x256xf32>
    %62 = vector.extract_strided_slice %44 {offsets = [0, 3], sizes = [8, 1], strides = [1, 1]} : vector<8x6xf32> to vector<8x1xf32>
    %63 = vector.extract_strided_slice %3 {offsets = [3, 0], sizes = [1, 256], strides = [1, 1]} : vector<6x256xf32> to vector<1x256xf32>
    %64 = vector.broadcast %62 : vector<8x1xf32> to vector<8x256xf32>
    %65 = vector.broadcast %63 : vector<1x256xf32> to vector<8x256xf32>
    %66 = arith.mulf %64, %65 : vector<8x256xf32>
    %67 = arith.addf %61, %66 : vector<8x256xf32>
    %68 = vector.extract_strided_slice %44 {offsets = [0, 4], sizes = [8, 1], strides = [1, 1]} : vector<8x6xf32> to vector<8x1xf32>
    %69 = vector.extract_strided_slice %3 {offsets = [4, 0], sizes = [1, 256], strides = [1, 1]} : vector<6x256xf32> to vector<1x256xf32>
    %70 = vector.broadcast %68 : vector<8x1xf32> to vector<8x256xf32>
    %71 = vector.broadcast %69 : vector<1x256xf32> to vector<8x256xf32>
    %72 = arith.mulf %70, %71 : vector<8x256xf32>
    %73 = arith.addf %67, %72 : vector<8x256xf32>
    %74 = vector.extract_strided_slice %44 {offsets = [0, 5], sizes = [8, 1], strides = [1, 1]} : vector<8x6xf32> to vector<8x1xf32>
    %75 = vector.extract_strided_slice %3 {offsets = [5, 0], sizes = [1, 256], strides = [1, 1]} : vector<6x256xf32> to vector<1x256xf32>
    %76 = vector.broadcast %74 : vector<8x1xf32> to vector<8x256xf32>
    %77 = vector.broadcast %75 : vector<1x256xf32> to vector<8x256xf32>
    %78 = arith.mulf %76, %77 : vector<8x256xf32>
    %79 = arith.addf %73, %78 : vector<8x256xf32>
    %cst_13 = arith.constant dense<0.000000e+00> : vector<8xf32>
    %80 = vector.multi_reduction <add>, %79, %cst_13 [1] : vector<8x256xf32> to vector<8xf32>
    %81 = vector.shape_cast %80 : vector<8xf32> to vector<8x1xf32>
    %cst_14 = arith.constant 3.906250e-03 : f32
    %82 = vector.broadcast %cst_14 : f32 to vector<8x1xf32>
    %83 = arith.mulf %81, %82 : vector<8x1xf32>
    %84 = vector.broadcast %83 : vector<8x1xf32> to vector<8x256xf32>
    %85 = arith.subf %79, %84 : vector<8x256xf32>
    %86 = arith.mulf %85, %85 : vector<8x256xf32>
    %cst_15 = arith.constant dense<0.000000e+00> : vector<8xf32>
    %87 = vector.multi_reduction <add>, %86, %cst_15 [1] : vector<8x256xf32> to vector<8xf32>
    %88 = vector.shape_cast %87 : vector<8xf32> to vector<8x1xf32>
    %cst_16 = arith.constant 3.906250e-03 : f32
    %89 = vector.broadcast %cst_16 : f32 to vector<8x1xf32>
    %90 = arith.mulf %88, %89 : vector<8x1xf32>
    %cst_17 = arith.constant 9.99999974E-6 : f32
    %91 = vector.broadcast %cst_17 : f32 to vector<8x1xf32>
    %92 = arith.addf %90, %91 : vector<8x1xf32>
    %93 = math.rsqrt %92 : vector<8x1xf32>
    %94 = vector.broadcast %93 : vector<8x1xf32> to vector<8x256xf32>
    %95 = arith.mulf %85, %94 : vector<8x256xf32>
    %96 = arith.addf %43, %95 : vector<8x256xf32>
    %cst_18 = arith.constant 0.000000e+00 : f32
    %97 = vector.broadcast %cst_18 : f32 to vector<8x256xf32>
    %98 = arith.maximumf %96, %97 : vector<8x256xf32>
    %c0_19 = arith.constant 0 : index
    %c0_20 = arith.constant 0 : index
    %99 = vector.load %arg5[%c0_19, %c0_20] : memref<8x1xf32, #tpu.memory_space<vmem>>, vector<8x1xf32>
    %100 = vector.broadcast %99 : vector<8x1xf32> to vector<8x256xf32>
    %101 = arith.mulf %98, %100 : vector<8x256xf32>
    %cst_21 = arith.constant dense<0.000000e+00> : vector<256xf32>
    %102 = vector.multi_reduction <add>, %101, %cst_21 [0] : vector<8x256xf32> to vector<256xf32>
    %103 = vector.shape_cast %102 : vector<256xf32> to vector<1x256xf32>
    %cst_22 = arith.constant dense<0.000000e+00> : vector<1xf32>
    %104 = vector.multi_reduction <add>, %103, %cst_22 [1] : vector<1x256xf32> to vector<1xf32>
    %105 = vector.shape_cast %104 : vector<1xf32> to vector<1x1xf32>
    %cst_23 = arith.constant 3.906250e-03 : f32
    %106 = vector.broadcast %cst_23 : f32 to vector<1x1xf32>
    %107 = arith.mulf %105, %106 : vector<1x1xf32>
    %108 = vector.broadcast %107 : vector<1x1xf32> to vector<1x256xf32>
    %109 = arith.subf %103, %108 : vector<1x256xf32>
    %110 = arith.mulf %109, %109 : vector<1x256xf32>
    %cst_24 = arith.constant dense<0.000000e+00> : vector<1xf32>
    %111 = vector.multi_reduction <add>, %110, %cst_24 [1] : vector<1x256xf32> to vector<1xf32>
    %112 = vector.shape_cast %111 : vector<1xf32> to vector<1x1xf32>
    %cst_25 = arith.constant 3.906250e-03 : f32
    %113 = vector.broadcast %cst_25 : f32 to vector<1x1xf32>
    %114 = arith.mulf %112, %113 : vector<1x1xf32>
    %cst_26 = arith.constant 9.99999974E-6 : f32
    %115 = vector.broadcast %cst_26 : f32 to vector<1x1xf32>
    %116 = arith.addf %114, %115 : vector<1x1xf32>
    %117 = math.rsqrt %116 : vector<1x1xf32>
    %118 = vector.broadcast %117 : vector<1x1xf32> to vector<1x256xf32>
    %119 = arith.mulf %109, %118 : vector<1x256xf32>
    %120 = arith.negf %119 : vector<1x256xf32>
    %121 = math.exp %120 : vector<1x256xf32>
    %cst_27 = arith.constant 1.000000e+00 : f32
    %122 = vector.broadcast %cst_27 : f32 to vector<1x256xf32>
    %123 = arith.addf %122, %121 : vector<1x256xf32>
    %124 = arith.divf %122, %123 : vector<1x256xf32>
    %125 = vector.broadcast %124 : vector<1x256xf32> to vector<4x256xf32>
    %126 = arith.mulf %1, %125 : vector<4x256xf32>
    %c0_28 = arith.constant 0 : index
    %c0_29 = arith.constant 0 : index
    %c0_30 = arith.constant 0 : index
    %127 = vector.load %arg6[%c0_28, %c0_29, %c0_30] : memref<1x4x256xf32, #tpu.memory_space<vmem>>, vector<1x4x256xf32>
    %128 = vector.shape_cast %127 : vector<1x4x256xf32> to vector<4x256xf32>
    %129 = vector.shape_cast %126 : vector<4x256xf32> to vector<1x4x256xf32>
    tpu.vector_store %arg6[%c0_28, %c0_29, %c0_30], %129 {strides = array<i32>} : memref<1x4x256xf32, #tpu.memory_space<vmem>>, vector<1x4x256xf32>,
    return
  }
  func.func @transform_0(%arg0: i32) -> (i32, i32, i32) {
    %c0_i32 = arith.constant 0 : i32
    %c0_i32_0 = arith.constant 0 : i32
    %c0_i32_1 = arith.constant 0 : i32
    return %arg0, %c0_i32, %c0_i32_0 : i32, i32, i32
  }
  func.func @transform_1(%arg0: i32) -> (i32, i32, i32) {
    %c0_i32 = arith.constant 0 : i32
    %c0_i32_0 = arith.constant 0 : i32
    %c0_i32_1 = arith.constant 0 : i32
    return %arg0, %c0_i32, %c0_i32_0 : i32, i32, i32
  }
  func.func @transform_2(%arg0: i32) -> (i32, i32) {
    %c0_i32 = arith.constant 0 : i32
    %c0_i32_0 = arith.constant 0 : i32
    %c0_i32_1 = arith.constant 0 : i32
    return %c0_i32, %c0_i32_0 : i32, i32
  }
  func.func @transform_3(%arg0: i32) -> (i32, i32) {
    %c0_i32 = arith.constant 0 : i32
    %c0_i32_0 = arith.constant 0 : i32
    %c0_i32_1 = arith.constant 0 : i32
    return %c0_i32, %c0_i32_0 : i32, i32
  }
  func.func @transform_4(%arg0: i32) -> (i32, i32) {
    %c0_i32 = arith.constant 0 : i32
    %c0_i32_0 = arith.constant 0 : i32
    %c0_i32_1 = arith.constant 0 : i32
    return %c0_i32, %c0_i32_0 : i32, i32
  }
  func.func @transform_5(%arg0: i32) -> (i32, i32, i32) {
    %c0_i32 = arith.constant 0 : i32
    %c0_i32_0 = arith.constant 0 : i32
    %c0_i32_1 = arith.constant 0 : i32
    return %arg0, %c0_i32, %c0_i32_0 : i32, i32, i32
  }
}

</mosaic_0001>

<bundles_post_ra>
// kernel: tpu_custom_call.1
= control target key start
LH: loop header
LB: loop body
LE: loop exit
PB: predicated region body
PF: predicated region fallthrough
CT: control target
= control target key end

     0   :  { %10 = vsyncpa [#allocation3], 0  ;;  %s962_s0 = inlined_call_operand.vmem [shape: f32[2,4,256], index: 0, kind: input, shape index: {}]   ;;  %s963_s1 = inlined_call_operand.vmem [shape: f32[2,6,256], index: 1, kind: input, shape index: {}]   ;;  %s964_s2 = inlined_call_operand.vmem [shape: f32[8,4], index: 2, kind: input, shape index: {}]   ;;  %s965_s3 = inlined_call_operand.vmem [shape: f32[8,6], index: 3, kind: input, shape index: {}]   ;;  %s966_s4 = inlined_call_operand.vmem [shape: f32[8,1], index: 4, kind: input, shape index: {}]   ;;  %s967_s5 = inlined_call_operand.hbm [shape: f32[2,4,256], index: 5, kind: output, shape index: {}]  }
   0x1   :  { %12 = vsyncpa [#allocation3 + $0x1], 0  ;;  %s813_s18 = smov 0   ;;  %s815_s19 = smov 0  }
   0x2   :  { %s817_s20 = smov 0   ;;  %s819_s21 = smov 0  }
   0x3 LB: > { %s834_s22 = sadd.s32 4294967295, %s774_s21   ;;  %s623_s23 = sadd.s32 4294967294, %s774_s21   ;;  %s774_s21 = sphi %s819_s21, %s973_s21   ;;  %s770_s20 = sphi %s817_s20, %s972_s20   ;;  %s766_s19 = sphi %s815_s19, %s971_s19   ;;  %s762_s18 = sphi %s813_s18, %s970_s18  }
   0x4   : > { %s838_s24 = sadd.s32 1, %s774_s21   ;;  %s140_s25 = sadd.s32 1, %s770_s20 }
   0x5   : > { %s137_s26 = ssub.s32 %s774_s21, %s838_s24  ;;  %p150_p0 = scmp.ne.s32.totalorder %s770_s20, %s766_s19 }
   0x6   : > { %p138_p1 = scmp.eq.s32.totalorder %s137_s26, 0  ;;  %p151_p2 = scmp.eq.s32.totalorder %s834_s22, 1 }
   0x7   : > { %p156_p3 = scmp.ne.s32.totalorder %s766_s19, %s762_s18  ;;  %p157_p4 = scmp.eq.s32.totalorder %s623_s23, 1 }
   0x8   : > { %s849_s27 = scalar_select %p138_p1, %s770_s20, %s140_s25  }
   0x9   : > { %p851_p5 = por %p151_p2, %p150_p0  ;;  %p855_p6 = por %p157_p4, %p156_p3 }
   0xa   : > { %p626_p7 = scmp.ge.s32.totalorder %s774_s21, 1  ;;  %p200_p8 = scmp.lt.s32.totalorder %s774_s21, 3 }
   0xc   : > { %p201_p9 = pnand %p626_p7, %p200_p8 }
   0xd   : > { %v367_v0 = vld [vmem:[%s965_s3] sm:$0xff] (!%p201_p9)  ;;  %v776_v1 = vmov (!%p201_p9), 2   ;;  %v777_v2 = vmov (!%p201_p9), 0   ;;  %v778_v4 = vmov (!%p201_p9), 1   ;;  %v779_v5 = vmov (!%p201_p9), 3   ;;  %p233_p10 = scmp.lt.s32.totalorder (!%p201_p9), %s834_s22, 1 }
   0xe   : > { %204 = sbr.rel (%p201_p9) target bundleno = 857 (0x359), region = 40  ;;  %689 = vset.pattern.permute.xlu1 (!%p201_p9), %v776_v1  ;;  %687 = vset.pattern.permute.xlu0 (!%p201_p9), %v777_v2  ;;  %v246_v3 = vld [vmem:[%s964_s2] sm:$0xff] (!%p201_p9)  ;;  %v780_v6 = vmov (!%p201_p9), 4   ;;  %v781_v7 = vmov (!%p201_p9), 5   ;;  %v253_v8 = vlaneseq (!%p201_p9)  ;;  %s230_s26 = sand.u32 (!%p201_p9), 1, %s766_s19  }
   0xf   : > { %400 = vperm.xlu1 (!%p201_p9), %689, %v367_v0   ;;  %370 = vperm.xlu0 (!%p201_p9), %687, %v367_v0   ;;  %s627_s30 = sshll.u32 (!%p201_p9), %s230_s26, 3  ;;  %s641_s6 = sshll.u32 (!%p201_p9), %s834_s22, 7 }
  0x10   : > { %v254_v9 = vshrl.u32 (!%p201_p9), %v253_v8, 7  ;;  %s232_s7 = scalar_lea.vmem (!%p201_p9), [#allocation2], %s627_s30  ;;  %s920_s11 = scalar_lea.hbm (!%p201_p9), %s967_s5, %s641_s6 }
  0x11   : > { %s552_s8 = sshll.u32 (!%p201_p9), %s232_s7, 4  ;;  %s538_s12 = scalar_lea.sflag (!%p201_p9), [#allocation3], %s230_s26  ;;  %s922_s8 = int_to_ptr.vmem [resolvable:$true] %s552_s8 }
  0x12   : > { %v872_v10 = vsub.s32 (!%p201_p9), 5, %v254_v9  ;;  %v255_v13 = vsub.s32 (!%p201_p9), 0, %v254_v9  ;;  %v279_v14 = vsub.s32 (!%p201_p9), 1, %v254_v9  ;;  %v874_v15 = vsub.s32 (!%p201_p9), 4, %v254_v9 }
  0x13   : > { %690 = vset.pattern.permute.xlu1 (!%p201_p9), %v777_v2  ;;  %688 = vset.pattern.permute.xlu0 (!%p201_p9), %v778_v4  ;;  %v309_v19 = vsub.s32 (!%p201_p9), 6, %v254_v9  ;;  %v335_v20 = vsub.s32 (!%p201_p9), 7, %v254_v9  ;;  %v305_v27 = vsub.s32 (!%p201_p9), 2, %v254_v9  ;;  %v331_v30 = vsub.s32 (!%p201_p9), 3, %v254_v9 }
  0x14   : > { %384 = vperm.xlu0 (!%p201_p9), %688, %v367_v0   ;;  %249 = vperm.xlu1 (!%p201_p9), %690, %v246_v3  }
  0x15   : > { %s234_s9 = scalar_select %p233_p10, %s834_s22, 1 }
  0x16   : > { %s782_s22 = smov [#allocation2]  }
  0x17   : > { %s639_s10 = sshll.u32 %s234_s9, 3  ;;  %s640_s14 = sshll.u32 %s234_s9, 4 }
  0x18   : > { %692 = vset.pattern.permute.xlu0 %v779_v5  ;;  %691 = vset.pattern.permute.xlu1 %v778_v4  ;;  %s237_s13 = scalar_lea.vmem %s962_s0, %s639_s10  ;;  %s242_s17 = scalar_lea.vmem %s963_s1, %s640_s14 }
  0x19   : > { %416 = vperm.xlu0 %692, %v367_v0   ;;  %274 = vperm.xlu1 %691, %v246_v3   ;;  %v879_v16 = vld [vmem:[%s237_s13] sm:$0xff]  ;;  %v886_v22 = vld [vmem:[%s242_s17 + $0x8] sm:$0x3f]  ;;  %s712_s13 = scalar_lea.vmem %s922_s8, 128  ;;  %s716_s14 = sshll.u32 %s782_s22, 4  ;;  %s717_s14 = int_to_ptr.vmem [resolvable:$false] %s716_s14 }
  0x1a   : > { %v280_v17 = vrot.slane %v879_v16, %v279_v14  ;;  %v284_v18 = vrot.slane %v879_v16, %v872_v10  ;;  %v884_v21 = vld [vmem:[%s242_s17] sm:$0x3f]  ;;  %v256_v25 = vrot.slane %v879_v16, %v255_v13  ;;  %v260_v26 = vrot.slane %v879_v16, %v874_v15  ;;  %p713_p11 = scmp.ne.s32.totalorder %s922_s8, %s712_s13  ;;  %s718_s15 = scalar_lea.vmem %s717_s14, 256 }
  0x1b   : > { %v376_v28 = vrot.slane %v884_v21, %v255_v13  ;;  %v380_v29 = vrot.slane %v886_v22, %v255_v13  ;;  %v390_v31 = vrot.slane %v884_v21, %v279_v14  ;;  %v394_v32 = vrot.slane %v886_v22, %v279_v14  ;;  %p719_p0 = scmp.lt.s32.totalorder %s922_s8, %s717_s14  ;;  %p720_p1 = scmp.lt.s32.totalorder %s718_s15, %s712_s13 }
  0x1c   : > { %v290_v33 = vrot.slane %v280_v17, %v279_v14  ;;  %v294_v34 = vrot.slane %v284_v18, %v279_v14  ;;  %v306_v35 = vrot.slane %v879_v16, %v305_v27  ;;  %v310_v36 = vrot.slane %v879_v16, %v309_v19  ;;  %p714_p12 = pnand %p713_p11, %p851_p5 }
  0x1d   : > { %693 = vset.pattern.permute.xlu1 %v776_v1  ;;  %326 = vperm.xlu0 %692, %v246_v3   ;;  %v332_v37 = vrot.slane %v879_v16, %v331_v30  ;;  %v336_v38 = vrot.slane %v879_v16, %v335_v20  ;;  %v266_v39 = vrot.slane %v256_v25, %v255_v13  ;;  %p721_p2 = por %p720_p1, %p719_p0 }
  0x1e   : > { %300 = vperm.xlu1 %693, %v246_v3   ;;  %v270_v40 = vrot.slane %v260_v26, %v255_v13  ;;  %v316_v49 = vrot.slane %v306_v35, %v305_v27  ;;  %v320_v50 = vrot.slane %v310_v36, %v305_v27  ;;  %v406_v53 = vrot.slane %v884_v21, %v305_v27  ;;  %p715_p13 = pneg %p714_p12 }
  0x1f   : > { %v342_v51 = vrot.slane %v332_v37, %v331_v30  ;;  %v346_v52 = vrot.slane %v336_v38, %v331_v30  ;;  %v410_v54 = vrot.slane %v886_v22, %v305_v27  ;;  %v422_v57 = vrot.slane %v884_v21, %v331_v30 }
  0x20   : > { %v426_v58 = vrot.slane %v886_v22, %v331_v30  ;;  %v438_v9 = vrot.slane %v884_v21, %v874_v15  ;;  %v458_v27 = vrot.slane %v886_v22, %v872_v10  ;;  %p722_p3 = pnand %p721_p2, %p715_p13 }
  0x21   : > { %697 = vset.pattern.permute.xlu0 %v777_v2 }
  0x22   : > { %694 = vset.pattern.permute.xlu1 %v780_v6 }
  0x23   : > { %432 = vperm.xlu1 %694, %v367_v0  }
  0x27   : > { %695 = vset.pattern.permute.xlu1 %v781_v7 }
  0x28   : > { %448 = vperm.xlu1 %695, %v367_v0  }
  0x2c   : > { %696 = vset.pattern.permute.xlu1 %v777_v2 }
  0x8e   : > { %v401_v11 = vpop.permute.xlu1 %400  ;;  %v371_v12 = vpop.permute.xlu0 %370 }
  0x8f   : > { %v381_v41 = vmul.f32 %v376_v28, %v371_v12  ;;  %v382_v42 = vmul.f32 %v380_v29, %v371_v12  ;;  %v411_v5 = vmul.f32 %v406_v53, %v401_v11  ;;  %v412_v6 = vmul.f32 %v410_v54, %v401_v11 }
  0x90   : > { %v442_v12 = vrot.slane %v886_v22, %v874_v15 }
  0x93   : > { %v385_v23 = vpop.permute.xlu0 %384  ;;  %v250_v24 = vpop.permute.xlu1 %249 }
  0x94   : > { %v395_v45 = vmul.f32 %v390_v31, %v385_v23  ;;  %v396_v46 = vmul.f32 %v394_v32, %v385_v23  ;;  %v271_v55 = vmul.f32 %v266_v39, %v250_v24  ;;  %v272_v56 = vmul.f32 %v270_v40, %v250_v24 }
  0x95   : > { %v454_v24 = vrot.slane %v884_v21, %v872_v10  ;;  %v483_v21 = vld [vmem:[%s966_s4] sm:$0xff] }
  0x96   : > { %v397_v60 = vadd.f32 %v395_v45, %v381_v41  ;;  %v398_v61 = vadd.f32 %v396_v46, %v382_v42 }
  0x98   : > { %v417_v43 = vpop.permute.xlu0 %416  ;;  %v275_v44 = vpop.permute.xlu1 %274  ;;  %v413_v13 = vadd.f32 %v411_v5, %v397_v60  ;;  %v414_v14 = vadd.f32 %v412_v6, %v398_v61 }
  0x99   : > { %v295_v47 = vmul.f32 %v290_v33, %v275_v44  ;;  %v296_v48 = vmul.f32 %v294_v34, %v275_v44  ;;  %v427_v17 = vmul.f32 %v422_v57, %v417_v43  ;;  %v428_v18 = vmul.f32 %v426_v58, %v417_v43 }
  0x9b   : > { %v297_v62 = vadd.f32 %v295_v47, %v271_v55  ;;  %v298_v63 = vadd.f32 %v296_v48, %v272_v56  ;;  %v429_v28 = vadd.f32 %v427_v17, %v413_v13  ;;  %v430_v29 = vadd.f32 %v428_v18, %v414_v14 }
  0x9c   : > { %v327_v59 = vpop.permute.xlu0 %326 }
  0x9d   : > { %v301_v0 = vpop.permute.xlu1 %300  ;;  %v347_v3 = vmul.f32 %v342_v51, %v327_v59  ;;  %v348_v4 = vmul.f32 %v346_v52, %v327_v59 }
  0x9e   : > { %v321_v1 = vmul.f32 %v316_v49, %v301_v0  ;;  %v322_v2 = vmul.f32 %v320_v50, %v301_v0 }
  0xa0   : > { %v323_v7 = vadd.f32 %v321_v1, %v297_v62  ;;  %v324_v8 = vadd.f32 %v322_v2, %v298_v63 }
  0xa2   : > { %v433_v19 = vpop.permute.xlu1 %432  ;;  %v349_v20 = vadd.f32 %v347_v3, %v323_v7  ;;  %v350_v23 = vadd.f32 %v348_v4, %v324_v8 }
  0xa3   : > { %v443_v25 = vmul.f32 %v438_v9, %v433_v19  ;;  %v444_v11 = vmul.f32 %v442_v12, %v433_v19 }
  0xa4   : > { %v351_v26 = vadd.f32 %v350_v23, %v349_v20 }
  0xa5   : > { %v445_v30 = vadd.f32 %v443_v25, %v429_v28  ;;  %v446_v31 = vadd.f32 %v444_v11, %v430_v29 }
  0xa6   : > { %352 = vadd.xlane.f32.xlu0 %v351_v26 }
  0xa7   : > { %v449_v15 = vpop.permute.xlu1 %448 }
  0xa8   : > { %v459_v32 = vmul.f32 %v454_v24, %v449_v15  ;;  %v460_v33 = vmul.f32 %v458_v27, %v449_v15 }
  0xaa   : > { %v461_v34 = vadd.f32 %v459_v32, %v445_v30  ;;  %v462_v35 = vadd.f32 %v460_v33, %v446_v31 }
  0xac   : > { %v463_v36 = vadd.f32 %v462_v35, %v461_v34 }
  0xae   : > { %464 = vadd.xlane.f32.xlu1 %v463_v36 }
  0xbf   : > { %486 = vperm.xlu1 %696, %v483_v21  }
 0x133   : > { %v353_v37 = vpop.xlane.xlu0 %352 }
 0x134   : > { %v354_v38 = vmul.f32 0.00390625, %v353_v37 }
 0x136   : > { %v355_v10 = vsub.f32 %v349_v20, %v354_v38  ;;  %v356_v22 = vsub.f32 %v350_v23, %v354_v38 }
 0x138   : > { %v357_v39 = vmul.f32 %v355_v10, %v355_v10  ;;  %v358_v40 = vmul.f32 %v356_v22, %v356_v22 }
 0x13a   : > { %v359_v41 = vadd.f32 %v358_v40, %v357_v39 }
 0x13b   : > { %v465_v42 = vpop.xlane.xlu1 %464 }
 0x13c   : > { %v466_v43 = vmul.f32 0.00390625, %v465_v42  ;;  %360 = vadd.xlane.f32.xlu0 %v359_v41 }
 0x13e   : > { %v467_v44 = vsub.f32 %v461_v34, %v466_v43  ;;  %v468_v45 = vsub.f32 %v462_v35, %v466_v43 }
 0x13f   : > { %v487_v63 = vpop.permute.xlu1 %486 }
 0x140   : > { %v469_v46 = vmul.f32 %v467_v44, %v467_v44  ;;  %v470_v47 = vmul.f32 %v468_v45, %v468_v45 }
 0x142   : > { %v471_v48 = vadd.f32 %v470_v47, %v469_v46 }
 0x144   : > { %472 = vadd.xlane.f32.xlu0 %v471_v48 }
 0x1c9   : > { %v361_v49 = vpop.xlane.xlu0 %360 }
 0x1ca   : > { %v362_v50 = vmul.f32 0.00390625, %v361_v49 }
 0x1cc   : > { %v363_v51 = vadd.f32 1e-05, %v362_v50 }
 0x1ce   : > { %698 = vrsqrt.f32 %v363_v51 }
 0x1d1   : > { %v473_v52 = vpop.xlane.xlu0 %472 }
 0x1d2   : > { %v474_v53 = vmul.f32 0.00390625, %v473_v52 }
 0x1d4   : > { %v475_v54 = vadd.f32 1e-05, %v474_v53 }
 0x1d6   : > { %700 = vrsqrt.f32 %v475_v54 }
 0x1d8   : > { %v699_v55 = vpop.eup %698 }
 0x1d9   : > { %v365_v57 = vmul.f32 %v699_v55, %v355_v10  ;;  %v366_v58 = vmul.f32 %v699_v55, %v356_v22 }
 0x1e0   : > { %v701_v56 = vpop.eup %700 }
 0x1e1   : > { %v477_v59 = vmul.f32 %v701_v56, %v467_v44  ;;  %v478_v60 = vmul.f32 %v701_v56, %v468_v45 }
 0x1e3   : > { %v479_v61 = vadd.f32 %v477_v59, %v365_v57  ;;  %v480_v62 = vadd.f32 %v478_v60, %v366_v58 }
 0x1e5   : > { %v481_v0 = vmax.f32 %v479_v61, 0.0  ;;  %v482_v1 = vmax.f32 %v480_v62, 0.0 }
 0x1e7   : > { %v489_v2 = vmul.f32 %v487_v63, %v481_v0  ;;  %v490_v3 = vmul.f32 %v487_v63, %v482_v1 }
 0x1e9   : > { %v491_v4 = vrot.slane %v489_v2, 4  ;;  %v497_v5 = vrot.slane %v490_v3, 4 }
 0x1eb   : > { %v492_v6 = vadd.f32 %v491_v4, %v489_v2  ;;  %v498_v7 = vadd.f32 %v497_v5, %v490_v3 }
 0x1ed   : > { %v493_v8 = vrot.slane %v492_v6, 2  ;;  %v499_v9 = vrot.slane %v498_v7, 2 }
 0x1ef   : > { %v494_v12 = vadd.f32 %v493_v8, %v492_v6  ;;  %v500_v13 = vadd.f32 %v499_v9, %v498_v7 }
 0x1f1   : > { %v495_v14 = vrot.slane %v494_v12, 1  ;;  %v501_v17 = vrot.slane %v500_v13, 1 }
 0x1f3   : > { %v496_v18 = vadd.f32 %v495_v14, %v494_v12  ;;  %v502_v19 = vadd.f32 %v501_v17, %v500_v13 }
 0x1f5   : > { %v503_v20 = vadd.f32 %v502_v19, %v496_v18 }
 0x1f7   : > { %504 = vadd.xlane.f32.xlu0 %v503_v20 }
 0x284   : > { %v505_v23 = vpop.xlane.xlu0 %504 }
 0x285   : > { %v506_v24 = vmul.f32 0.00390625, %v505_v23 }
 0x287   : > { %v507_v25 = vsub.f32 %v496_v18, %v506_v24  ;;  %v508_v11 = vsub.f32 %v502_v19, %v506_v24 }
 0x289   : > { %v509_v26 = vmul.f32 %v507_v25, %v507_v25  ;;  %v510_v27 = vmul.f32 %v508_v11, %v508_v11 }
 0x28b   : > { %v511_v28 = vadd.f32 %v510_v27, %v509_v26 }
 0x28d   : > { %512 = vadd.xlane.f32.xlu0 %v511_v28 }
 0x31a   : > { %v513_v29 = vpop.xlane.xlu0 %512 }
 0x31b   : > { %v514_v15 = vmul.f32 0.00390625, %v513_v29 }
 0x31d   : > { %v515_v30 = vadd.f32 1e-05, %v514_v15 }
 0x31f   : > { %702 = vrsqrt.f32 %v515_v30 }
 0x329   : > { %v703_v31 = vpop.eup %702 }
 0x32a   : > { %v517_v32 = vmul.f32 %v703_v31, %v507_v25  ;;  %v518_v33 = vmul.f32 %v703_v31, %v508_v11 }
 0x32c   : > { %v632_v34 = vmul.f32 -1.442695, %v517_v32  ;;  %v633_v35 = vmul.f32 -1.442695, %v518_v33 }
 0x32e   : > { %704 = vpow2.f32 %v632_v34 }
 0x32f   : > { %706 = vpow2.f32 %v633_v35 }
 0x338   : > { %v705_v36 = vpop.eup %704 }
 0x339   : > { %v707_v21 = vpop.eup %706  ;;  %v525_v37 = vadd.f32 1.0, %v705_v36 }
 0x33a   : > { %v526_v38 = vadd.f32 1.0, %v707_v21 }
 0x33b   : > { %708 = vrcp.f32 %v525_v37 }
 0x33c   : > { %710 = vrcp.f32 %v526_v38 }
 0x345   : > { %v709_v10 = vpop.eup %708 }
 0x346   : > { %v711_v22 = vpop.eup %710 }
 0x347   : > { %v533_v39 = vcombine.low %v709_v10, %v711_v22 }
 0x349   : > { %v535_v40 = vmul.f32 %v533_v39, %v879_v16 }
 0x34b   : > { %536 = vst [vmem:[%s232_s7] sm:$0xff] %v535_v40 }
 0x34c   : > { %725 = shalt.err (!%p722_p3)
}
 0x34d   : > { %s726_s16 = scalar_lea.hbm %s920_s11, 128  ;;  %s730_s25 = scalar_lea.hbm %s967_s5, 256 }
 0x34e   : > { %p727_p4 = scmp.ne.s32.totalorder %s920_s11, %s726_s16  ;;  %p731_p9 = scmp.lt.u32.totalorder %s920_s11, %s967_s5 }
 0x34f   : > { %p732_p10 = scmp.lt.u32.totalorder %s730_s25, %s726_s16  ;;  %p734_p12 = scmp.lt.u32.totalorder %s726_s16, %s920_s11 }
 0x350   : > { %p728_p7 = pnand %p727_p4, %p851_p5 }
 0x351   : > { %p733_p11 = por %p732_p10, %p731_p9 }
 0x352   : > { %p729_p8 = pneg %p728_p7 }
 0x353   : > { %p735_p13 = por %p734_p12, %p733_p11 }
 0x355   : > { %p736_p0 = pnand %p735_p13, %p729_p8 }
 0x357   : > { %739 = shalt.err (!%p736_p0)
}
 0x358   : > { %642 = dma.vmem_to_hbm [thread:$0]  (%p851_p5), %s922_s8, 128, %s920_s11, %s538_s12  }
 0x359 PF: > { %p648_p1 = scmp.ge.s32.totalorder %s774_s21, 2  ;;  %s564_s6 = sand.u32 1, %s762_s18  }
 0x35a   : > { %s565_s7 = scalar_lea.sflag [#allocation3], %s564_s6 }
 0x35b   : > { %p645_p2 = pnand %p648_p1, %p855_p6 }
 0x35d   : > { %757 = dma.done.wait (!%p645_p2), %s565_s7, 128  }
 0x35e   : > { %759 = vsyncadd (!%p645_p2), %s565_s7, 4294967168  ;;  %p15_p3 = scmp.ge.s32.totalorder %s838_s24, 4   ;;  %s970_s18 = smov %s766_s19 }
 0x35f   : > { %s971_s19 = smov %s770_s20  ;;  %s972_s20 = smov %s849_s27 }
 0x360   : > { %s973_s21 = smov %s838_s24  ;;  %17 = sbr.rel (!%p15_p3) target bundleno = 3 (0x3), region = 78 }
 0x367   :  { %570 = vsyncpa [#allocation3], 1 }
 0x368   :  { %572 = vsyncpa [#allocation3 + $0x1], 1 }

</bundles_post_ra>
